<compile_context>
chip_gen: v7x
topology: tpu7x:2x2x1
jax: 0.10.0
libtpu: 0.0.40
codegen_flags: <defaults>
</compile_context>

<pallas_src>
import functools

import jax
import jax.numpy as jnp
from jax.experimental import pallas as pl
from jax.experimental.pallas import tpu as pltpu


def _round_up(v, m):
    return -(-v // m) * m


def _conv_bn_act_kernel(x_ref, w_ref, b_ref, o_ref, *, K, Wp, pad):
    """One batch block: tap rolls -> in-register im2col -> single MXU matmul."""
    Lb = x_ref.shape[1]                      # block_n * Lp lanes (static)
    x = x_ref[...]                           # (C1p, Lb) f32, stays in registers

    # Tap (kh, kw) needs source lane q + s with s = (kh-pad)*Wp + (kw-pad).
    # pltpu.roll (jnp.roll convention) by -s gives piece[q] = x[q + s]; the
    # circular wrap only affects output lanes that the wrapper discards.
    pieces = []
    for kh in range(K):
        for kw in range(K):
            s = (kh - pad) * Wp + (kw - pad)
            if s == 0:
                pieces.append(x)
            else:
                pieces.append(pltpu.roll(x, shift=(-s) % Lb, axis=1))
    patch = jnp.concatenate(pieces, axis=0)  # (K*K*C1p, Lb), 8-sublane aligned

    # One BN-folded matmul + bias epilogue + LeakyReLU(0.01); the store is a
    # full-width, lane-dense vst over the whole (C2p, Lb) block.
    y = jnp.dot(w_ref[...], patch, preferred_element_type=jnp.float32)
    y = y + b_ref[...]                       # (C2p, 1) lane-broadcast bias
    y = jnp.maximum(y, 0.01 * y)             # LeakyReLU(0.01)
    o_ref[...] = y.astype(o_ref.dtype)


def conv_bn_act(x_nchw, w_oikk, gamma, beta, running_mean, running_var,
                *, k=3, eps=1e-3, block_n=None):
    """Forward of Conv module. x_nchw: (N, C1, H, W). Returns (N, C2, H, W)."""
    N, C1, H, W = x_nchw.shape
    C2 = w_oikk.shape[0]
    assert k % 2 == 1, "only odd k with 'same' autopad (stride=1) is supported"
    pad = k // 2
    Hp, Wp = H + 2 * pad, W + 2 * pad
    C1p = _round_up(C1, 8)                   # sublane-aligned tap pieces
    C2p = _round_up(C2, 8)                   # sublane-aligned output rows
    KKC1p = k * k * C1p
    Lp = _round_up(Hp * Wp, 128)             # per-image lane slot

    # block_n: >=2 grid steps when N >= 2 (v7x has 2 TCs); cap so the
    # in-register patch (KKC1p x block-lanes f32) stays well inside the
    # 64 x 4 KiB vreg file.
    if block_n is None:
        block_n = max(1, N // 2)
        while block_n > 1 and KKC1p * block_n * Lp * 4 > 96 * 1024:
            block_n //= 2
    while N % block_n:
        block_n -= 1
    lanes_b = block_n * Lp
    grid = (N // block_n,)

    # Layout glue at the PyTorch boundary (one fused XLA pass):
    # NCHW -> (C1p, N, Hp, Wp) zero-padded -> per-image flattened lane slots.
    x_c = jnp.transpose(x_nchw.astype(jnp.float32), (1, 0, 2, 3))        # (C1,N,H,W)
    x_p = jnp.pad(x_c, ((0, C1p - C1), (0, 0), (pad, pad), (pad, pad)))  # (C1p,N,Hp,Wp)
    x_flat = x_p.reshape(C1p, N, Hp * Wp)
    x_flat = jnp.pad(x_flat, ((0, 0), (0, 0), (0, Lp - Hp * Wp)))
    x_flat = x_flat.reshape(C1p, N * Lp)

    # Fold eval-mode BN into weights/bias; match the kernel's (tap-major,
    # channel-minor) contraction order; pad to (C2p, k*k*C1p).
    scale = (gamma.astype(jnp.float32)
             / jnp.sqrt(running_var.astype(jnp.float32) + eps))          # (C2,)
    bias = beta.astype(jnp.float32) - running_mean.astype(jnp.float32) * scale
    w_f = w_oikk.astype(jnp.float32) * scale[:, None, None, None]        # (C2,C1,K,K)
    w_f = jnp.transpose(w_f, (0, 2, 3, 1))                               # (C2,K,K,C1)
    w_f = jnp.pad(w_f, ((0, C2p - C2), (0, 0), (0, 0), (0, C1p - C1)))
    w_mat = w_f.reshape(C2p, KKC1p)
    b_mat = jnp.pad(bias, (0, C2p - C2)).reshape(C2p, 1)

    # VMEM budget: double-buffered in/out blocks + resident weights/bias.
    block_bytes = 4 * (2 * C1p * lanes_b + 2 * C2p * lanes_b
                       + C2p * KKC1p + C2p)
    try:
        vmem_cap = pltpu.get_tpu_info().vmem_capacity_bytes
    except Exception:
        vmem_cap = 64 * 1024 * 1024
    vmem_limit = int(min(max(4 * block_bytes, 4 * 1024 * 1024), vmem_cap // 2))

    kernel = functools.partial(_conv_bn_act_kernel, K=k, Wp=Wp, pad=pad)

    out_flat = pl.pallas_call(
        kernel,
        out_shape=jax.ShapeDtypeStruct((C2p, N * Lp), jnp.float32),
        grid_spec=pltpu.PrefetchScalarGridSpec(
            num_scalar_prefetch=0,
            grid=grid,
            in_specs=[
                pl.BlockSpec((C1p, lanes_b), lambda n: (0, n)),
                pl.BlockSpec((C2p, KKC1p), lambda n: (0, 0)),
                pl.BlockSpec((C2p, 1), lambda n: (0, 0)),
            ],
            out_specs=pl.BlockSpec((C2p, lanes_b), lambda n: (0, n)),
        ),
        compiler_params=pltpu.CompilerParams(
            dimension_semantics=("parallel",),
            vmem_limit_bytes=vmem_limit),
    )(x_flat, w_mat, b_mat)

    # Lane-dense output back to NCHW: drop slot tails and the pad border.
    out = out_flat.reshape(C2p, N, Lp)[:C2, :, :Hp * Wp]
    out = out.reshape(C2, N, Hp, Wp)[:, :, pad:pad + H, pad:pad + W]
    return jnp.transpose(out, (1, 0, 2, 3))


def _reference(x_nchw, w_oikk, gamma, beta, running_mean, running_var,
               *, k=3, eps=1e-3):
    """Plain-JAX reference (lax conv + eval BN + LeakyReLU) for verification."""
    p = k // 2
    y = jax.lax.conv_general_dilated(
        x_nchw.astype(jnp.float32), w_oikk.astype(jnp.float32),
        window_strides=(1, 1), padding=((p, p), (p, p)),
        dimension_numbers=("NCHW", "OIHW", "NCHW"))
    scale = gamma / jnp.sqrt(running_var + eps)
    bias = beta - running_mean * scale
    y = y * scale[None, :, None, None] + bias[None, :, None, None]
    return jnp.where(y > 0, y, 0.01 * y)


if __name__ == "__main__":
    # Small shapes consistent with the module: N=2, c1=4, c2=8, 16x16, k=3.
    N, C1, C2, H, W, K = 2, 4, 8, 16, 16, 3

    key = jax.random.PRNGKey(0)
    kx, kw, kg, kb, km, kv = jax.random.split(key, 6)

    x = jax.random.normal(kx, (N, C1, H, W), dtype=jnp.float32)
    w = 0.1 * jax.random.normal(kw, (C2, C1, K, K), dtype=jnp.float32)
    gamma = 1.0 + 0.1 * jax.random.normal(kg, (C2,), dtype=jnp.float32)
    beta = 0.1 * jax.random.normal(kb, (C2,), dtype=jnp.float32)
    running_mean = 0.1 * jax.random.normal(km, (C2,), dtype=jnp.float32)
    running_var = jnp.abs(jax.random.normal(kv, (C2,), dtype=jnp.float32)) + 0.5

    out = conv_bn_act(x, w, gamma, beta, running_mean, running_var, k=K)
    out = jax.block_until_ready(out)

    ref = _reference(x, w, gamma, beta, running_mean, running_var, k=K)
    assert out.shape == (N, C2, H, W)
    assert jnp.allclose(out, ref, atol=2e-4, rtol=2e-4), "mismatch vs reference"

    print("KERNEL_OK")
</pallas_src>

<mosaic_0001>
module attributes {stable_mosaic.version = 11 : i64} {
  func.func @_conv_bn_act_kernel(%arg0: i32, %arg1: memref<8x384xf32, #tpu.memory_space<vmem>>, %arg2: memref<8x72xf32, #tpu.memory_space<vmem>>, %arg3: memref<8x1xf32, #tpu.memory_space<vmem>>, %arg4: memref<8x384xf32, #tpu.memory_space<vmem>>) attributes {dimension_semantics = [#tpu.dimension_semantics<parallel>], iteration_bounds = array<i64: 2>, scalar_prefetch = 0 : i64, scratch_operands = 0 : i64, tpu.core_type = #tpu.core_type<tc>, window_params = [{transform_indices = @transform_0, window_bounds = array<i64: 8, 384>}, {pipeline_mode = #tpu.pipeline_mode<synchronous>, transform_indices = @transform_1, window_bounds = array<i64: 8, 72>}, {pipeline_mode = #tpu.pipeline_mode<synchronous>, transform_indices = @transform_2, window_bounds = array<i64: 8, 1>}, {transform_indices = @transform_3, window_bounds = array<i64: 8, 384>}]} {
    %c0 = arith.constant 0 : index
    %c0_0 = arith.constant 0 : index
    %0 = vector.load %arg1[%c0, %c0_0] : memref<8x384xf32, #tpu.memory_space<vmem>>, vector<8x384xf32>
    %c19_i32 = arith.constant 19 : i32
    %1 = tpu.dynamic_rotate %0 by %c19_i32 dim 1 : vector<8x384xf32>, i32 -> vector<8x384xf32>
    %c18_i32 = arith.constant 18 : i32
    %2 = tpu.dynamic_rotate %0 by %c18_i32 dim 1 : vector<8x384xf32>, i32 -> vector<8x384xf32>
    %c17_i32 = arith.constant 17 : i32
    %3 = tpu.dynamic_rotate %0 by %c17_i32 dim 1 : vector<8x384xf32>, i32 -> vector<8x384xf32>
    %c1_i32 = arith.constant 1 : i32
    %4 = tpu.dynamic_rotate %0 by %c1_i32 dim 1 : vector<8x384xf32>, i32 -> vector<8x384xf32>
    %c383_i32 = arith.constant 383 : i32
    %5 = tpu.dynamic_rotate %0 by %c383_i32 dim 1 : vector<8x384xf32>, i32 -> vector<8x384xf32>
    %c367_i32 = arith.constant 367 : i32
    %6 = tpu.dynamic_rotate %0 by %c367_i32 dim 1 : vector<8x384xf32>, i32 -> vector<8x384xf32>
    %c366_i32 = arith.constant 366 : i32
    %7 = tpu.dynamic_rotate %0 by %c366_i32 dim 1 : vector<8x384xf32>, i32 -> vector<8x384xf32>
    %c365_i32 = arith.constant 365 : i32
    %8 = tpu.dynamic_rotate %0 by %c365_i32 dim 1 : vector<8x384xf32>, i32 -> vector<8x384xf32>
    %9 = tpu.concatenate %1, %2, %3, %4, %0, %5, %6, %7, %8 in 0 : vector<8x384xf32>, vector<8x384xf32>, vector<8x384xf32>, vector<8x384xf32>, vector<8x384xf32>, vector<8x384xf32>, vector<8x384xf32>, vector<8x384xf32>, vector<8x384xf32> -> vector<72x384xf32>
    %c0_1 = arith.constant 0 : index
    %c0_2 = arith.constant 0 : index
    %10 = vector.load %arg2[%c0_1, %c0_2] : memref<8x72xf32, #tpu.memory_space<vmem>>, vector<8x72xf32>
    %cst = arith.constant dense<0.000000e+00> : vector<8x384xf32>
    %11 = tpu.matmul %10, %9, %cst {dimension_numbers = #tpu.dot_dimension_numbers<[1], [0], [0], [1], [0, 0, 1, 1], [], []>} : vector<8x72xf32>, vector<72x384xf32>, vector<8x384xf32> -> vector<8x384xf32>
    %c0_3 = arith.constant 0 : index
    %c0_4 = arith.constant 0 : index
    %12 = vector.load %arg3[%c0_3, %c0_4] : memref<8x1xf32, #tpu.memory_space<vmem>>, vector<8x1xf32>
    %13 = vector.broadcast %12 : vector<8x1xf32> to vector<8x384xf32>
    %14 = arith.addf %11, %13 : vector<8x384xf32>
    %cst_5 = arith.constant 0.00999999977 : f32
    %15 = vector.broadcast %cst_5 : f32 to vector<8x384xf32>
    %16 = arith.mulf %15, %14 : vector<8x384xf32>
    %17 = arith.maximumf %14, %16 : vector<8x384xf32>
    %c0_6 = arith.constant 0 : index
    %c0_7 = arith.constant 0 : index
    %18 = vector.load %arg4[%c0_6, %c0_7] : memref<8x384xf32, #tpu.memory_space<vmem>>, vector<8x384xf32>
    tpu.vector_store %arg4[%c0_6, %c0_7], %17 {strides = array<i32>} : memref<8x384xf32, #tpu.memory_space<vmem>>, vector<8x384xf32>,
    return
  }
  func.func @transform_0(%arg0: i32) -> (i32, i32) {
    %c0_i32 = arith.constant 0 : i32
    %c0_i32_0 = arith.constant 0 : i32
    return %c0_i32, %arg0 : i32, i32
  }
  func.func @transform_1(%arg0: i32) -> (i32, i32) {
    %c0_i32 = arith.constant 0 : i32
    %c0_i32_0 = arith.constant 0 : i32
    %c0_i32_1 = arith.constant 0 : i32
    return %c0_i32, %c0_i32_0 : i32, i32
  }
  func.func @transform_2(%arg0: i32) -> (i32, i32) {
    %c0_i32 = arith.constant 0 : i32
    %c0_i32_0 = arith.constant 0 : i32
    %c0_i32_1 = arith.constant 0 : i32
    return %c0_i32, %c0_i32_0 : i32, i32
  }
  func.func @transform_3(%arg0: i32) -> (i32, i32) {
    %c0_i32 = arith.constant 0 : i32
    %c0_i32_0 = arith.constant 0 : i32
    return %c0_i32, %arg0 : i32, i32
  }
}

</mosaic_0001>

<bundles_post_ra>
// kernel: tpu_custom_call.1
= control target key start
LH: loop header
LB: loop body
LE: loop exit
PB: predicated region body
PF: predicated region fallthrough
CT: control target
= control target key end

     0   :  { %8 = vsyncpa [#allocation3], 0  ;;  %s1061_s0 = inlined_call_operand.hbm [shape: f32[8,768], index: 0, kind: input, shape index: {}]   ;;  %s1062_s1 = inlined_call_operand.vmem [shape: f32[8,72], index: 1, kind: input, shape index: {}]   ;;  %s1063_s2 = inlined_call_operand.vmem [shape: f32[8,1], index: 2, kind: input, shape index: {}]   ;;  %s1064_s3 = inlined_call_operand.hbm [shape: f32[8,768], index: 3, kind: output, shape index: {}]  }
   0x1   :  { %10 = vsyncpa [#allocation3 + $0x1], 0 }
   0x2   :  { %11 = vsyncpa [#allocation4], 0 }
   0x3   :  { %13 = vsyncpa [#allocation4 + $0x1], 0  ;;  %s820_s12 = smov 0   ;;  %s822_s13 = smov 0  }
   0x4   :  { %s824_s14 = smov 0   ;;  %s826_s15 = smov 0  }
   0x5 LB: > { %s841_s16 = sadd.s32 4294967295, %s784_s15   ;;  %s520_s17 = sadd.s32 4294967294, %s784_s15   ;;  %s784_s15 = sphi %s826_s15, %s1078_s15   ;;  %s780_s14 = sphi %s824_s14, %s1077_s14   ;;  %s776_s13 = sphi %s822_s13, %s1076_s13   ;;  %s772_s12 = sphi %s820_s12, %s1075_s12  }
   0x6   : > { %s845_s18 = sadd.s32 1, %s784_s15   ;;  %s26_s19 = sadd.s32 1, %s780_s14 }
   0x7   : > { %s23_s20 = ssub.s32 %s784_s15, %s845_s18  ;;  %p33_p0 = scmp.ne.s32.totalorder %s780_s14, %s776_s13 }
   0x8   : > { %p24_p1 = scmp.eq.s32.totalorder %s23_s20, 0  ;;  %p34_p2 = scmp.eq.s32.totalorder %s784_s15, 0 }
   0x9   : > { %p39_p3 = scmp.ne.s32.totalorder %s776_s13, %s772_s12  ;;  %p40_p4 = scmp.eq.s32.totalorder %s841_s16, 0 }
   0xa   : > { %s857_s21 = scalar_select %p24_p1, %s780_s14, %s26_s19  }
   0xb   : > { %p35_p5 = por %p34_p2, %p33_p0  ;;  %p859_p6 = por %p40_p4, %p39_p3 }
   0xc   : > { %p105_p7 = scmp.eq.s32.totalorder %s841_s16, 1  ;;  %p111_p8 = scmp.eq.s32.totalorder %s520_s17, 1 }
   0xd   : > { %p605_p10 = scmp.lt.s32.totalorder %s784_s15, 2  ;;  %s137_s25 = sand.u32 1, %s780_s14  }
   0xe   : > { %p866_p11 = por %p105_p7, %p33_p0  ;;  %p870_p12 = por %p111_p8, %p39_p3 }
   0xf   : > { %s530_s26 = smul.u32 384, %s784_s15  ;;  %p881_p13 = pnand %p605_p10, %p35_p5 }
  0x10   : > { %s1067_s23 = scalar_select %p866_p11, 1, 0 }
  0x11   : > { %s1068_s24 = scalar_select %p870_p12, 1, 0 }
  0x12   : > { %s591_s27 = smul.u32 24, %s137_s25  ;;  %s879_s30 = scalar_lea.hbm %s1061_s0, %s530_s26 }
  0x13   : > { %s138_s7 = scalar_lea.sflag [#allocation3], %s137_s25  ;;  %s688_s8 = scalar_lea.hbm %s879_s30, 384 }
  0x14   : > { %s141_s5 = scalar_lea.vmem [#allocation2], %s591_s27  ;;  %p689_p2 = scmp.ne.s32.totalorder %s879_s30, %s688_s8 }
  0x15   : > { %s149_s6 = sshll.u32 %s141_s5, 4  ;;  %p690_p3 = pneg %p881_p13  ;;  %s886_s6 = int_to_ptr.vmem [resolvable:$true] %s149_s6 }
  0x16   : > { %s693_s11 = scalar_lea.hbm %s1061_s0, 768  ;;  %p694_p7 = scmp.lt.u32.totalorder %s879_s30, %s1061_s0 }
  0x17   : > { %p691_p4 = pnand %p690_p3, %p689_p2  ;;  %p695_p8 = scmp.lt.u32.totalorder %s693_s11, %s688_s8 }
  0x18   : > { %p697_p9 = scmp.lt.u32.totalorder %s688_s8, %s879_s30 }
  0x19   : > { %p692_p5 = pneg %p691_p4  ;;  %p696_p10 = por %p695_p8, %p694_p7 }
  0x1b   : > { %p698_p0 = por %p697_p9, %p696_p10 }
  0x1d   : > { %p699_p1 = pnand %p698_p0, %p692_p5 }
  0x1f   : > { %702 = shalt.err (!%p699_p1)
}
  0x20   : > { %s703_s20 = scalar_lea.vmem %s886_s6, 384  ;;  %s786_s25 = smov [#allocation2]  }
  0x21   : > { %p704_p2 = scmp.ne.s32.totalorder %s886_s6, %s703_s20  ;;  %s708_s26 = sshll.u32 %s786_s25, 4  ;;  %s709_s26 = int_to_ptr.vmem [resolvable:$false] %s708_s26 }
  0x22   : > { %s710_s27 = scalar_lea.vmem %s709_s26, 768  ;;  %p711_p11 = scmp.lt.s32.totalorder %s886_s6, %s709_s26 }
  0x23   : > { %p706_p4 = pnand %p704_p2, %p690_p3  ;;  %p712_p7 = scmp.lt.s32.totalorder %s710_s27, %s703_s20 }
  0x25   : > { %p707_p12 = pneg %p706_p4  ;;  %p713_p8 = por %p712_p7, %p711_p11 }
  0x27   : > { %p714_p9 = pnand %p713_p8, %p707_p12 }
  0x29   : > { %717 = shalt.err (!%p714_p9)
}
  0x2a   : > { %600 = dma.hbm_to_vmem [thread:$0]  (!%p881_p13), %s879_s30, 384, %s886_s6, %s138_s7  }
  0x2b   : > { %p1070_p0 = scmp.lt.s32.totalorder %s784_s15, 3  ;;  %p1071_p1 = scmp.ge.s32.totalorder %s784_s15, 1 }
  0x2d   : > { %p155_p3 = pnand %p1071_p1, %p1070_p0 }
  0x2e   : > { %s919_s28 = sand.u32 (!%p155_p3), 1, %s776_s13  }
  0x2f   : > { %158 = sbr.rel (%p155_p3) target bundleno = 441 (0x1b9), region = 32  ;;  %s161_s5 = scalar_lea.sflag (!%p155_p3), [#allocation3], %s919_s28 }
  0x30   : > { %s592_s29 = smul.u32 (!%p155_p3), 24, %s919_s28 }
  0x32   : > { %s164_s4 = scalar_lea.vmem (!%p155_p3), [#allocation2], %s592_s29 }
  0x36   : > { %763 = dma.done.wait (%p859_p6), %s161_s5, 384  }
  0x37   : > { %765 = vsyncadd (%p859_p6), %s161_s5, 4294966912  ;;  %v787_v0 = vmov 0.0|0.0   ;;  %v930_v1 = vld [vmem:[%s164_s4 + $0x10] sm:$0xff]  ;;  %v932_v2 = vld [vmem:[%s164_s4] sm:$0xff]  ;;  %s788_s30 = smov 19   ;;  %s789_s6 = smov 18   ;;  %v198_v9 = vlaneseq }
  0x38   : > { %579 = vmatprep.subr.bf16.mxu1 %v787_v0  ;;  %v934_v3 = vld [vmem:[%s164_s4 + $0x8] sm:$0xff]  ;;  %196 = vrot.lane.b32.xlu1 %v930_v1, %s788_s30  ;;  %s790_s22 = smov 1   ;;  %s791_s7 = smov 17   ;;  %v794_v6 = vmov 0.0   ;;  %vm796_vm0 = vmmov 0   ;;  %v797_v7 = vmov 0  }
  0x39   : > { %v651_v4 = vpack.i.bf16 %v934_v3, %v932_v2  ;;  %v671_v5 = vpack.i.bf16 %v930_v1, %v934_v3  ;;  %s792_s8 = smov 127   ;;  %s793_s9 = smov 110   ;;  %349 = vmatprep.mubr.f32.mxu0 %v794_v6  ;;  %560 = vmatprep.mubr.msk.f32.mxu1 %vm796_vm0, %v794_v6  ;;  %v275_v8 = vld [vmem:[%s1063_s2] sm:$0xff]  ;;  %v955_v11 = vand.u32 127, %v198_v9  ;;  %vm281_vm9 = vcmask 588800  }
  0x3a   : > { %s795_s10 = smov 111   ;;  %687 = vset.pattern.permute.xlu0 %v797_v7  ;;  %686 = vset.pattern.permute.xlu1 %v797_v7  ;;  %s798_s11 = smov 109  }
  0x3b   : > { %652 = vrot.lane.b32.xlu0 %v651_v4, %s788_s30  ;;  %vm200_vm1 = vcmp.lt.s32.totalorder %v955_v11, 19  ;;  %vm210_vm2 = vcmp.lt.s32.totalorder %v955_v11, 18  ;;  %vm230_vm3 = vcmp.lt.s32.totalorder %v955_v11, 1  ;;  %vm220_vm4 = vcmp.lt.s32.totalorder %v955_v11, 17  ;;  %s531_s26 = smul.u32 384, %s841_s16  ;;  %s186_s27 = scalar_lea.vmem [#allocation5], %s592_s29 }
  0x3c   : > { %208 = vrot.lane.b32.xlu1 %v930_v1, %s789_s6  ;;  %vm240_vm5 = vcmp.lt.s32.totalorder %v955_v11, 127  ;;  %vm260_vm6 = vcmp.lt.s32.totalorder %v955_v11, 110  ;;  %vm250_vm7 = vcmp.lt.s32.totalorder %v955_v11, 111  ;;  %vm270_vm8 = vcmp.lt.s32.totalorder %v955_v11, 109  ;;  %s450_s5 = sshll.u32 %s186_s27, 4  ;;  %s436_s16 = scalar_lea.sflag [#allocation4], %s919_s28  ;;  %s1019_s5 = int_to_ptr.vmem [resolvable:$true] %s450_s5 }
  0x3d   : > { %s718_s29 = scalar_lea.vmem %s1019_s5, 384  ;;  %p1072_p11 = scmp.ne.s32.totalorder %s1067_s23, 0 }
  0x3e   : > { %p719_p6 = scmp.ne.s32.totalorder %s1019_s5, %s718_s29 }
  0x3f   : > { %657 = vrot.lane.b32.xlu0 %v651_v4, %s789_s6  ;;  %s1017_s6 = scalar_lea.hbm %s1064_s3, %s531_s26 }
  0x40   : > { %667 = vrot.lane.b32.xlu1 %v651_v4, %s790_s22  ;;  %p720_p12 = pnand %p719_p6, %p1072_p11 }
  0x42   : > { %p721_p13 = pneg %p720_p12 }
  0x43   : > { %662 = vrot.lane.b32.xlu0 %v651_v4, %s791_s7 }
  0x44   : > { %228 = vrot.lane.b32.xlu1 %v930_v1, %s790_s22  ;;  %s799_s22 = smov [#allocation5]  }
  0x47   : > { %218 = vrot.lane.b32.xlu0 %v930_v1, %s791_s7  ;;  %s722_s7 = sshll.u32 %s799_s22, 4  ;;  %s723_s7 = int_to_ptr.vmem [resolvable:$false] %s722_s7 }
  0x48   : > { %234 = vrot.lane.b32.xlu1 %v932_v2, %s792_s8  ;;  %p725_p5 = scmp.lt.s32.totalorder %s1019_s5, %s723_s7 }
  0x4b   : > { %672 = vrot.lane.b32.xlu0 %v671_v5, %s792_s8  ;;  %s724_s8 = scalar_lea.vmem %s723_s7, 768 }
  0x4c   : > { %682 = vrot.lane.b32.xlu1 %v671_v5, %s793_s9  ;;  %p726_p10 = scmp.lt.s32.totalorder %s724_s8, %s718_s29 }
  0x4e   : > { %p727_p2 = por %p726_p10, %p725_p5 }
  0x4f   : > { %677 = vrot.lane.b32.xlu0 %v671_v5, %s795_s10 }
  0x50   : > { %254 = vrot.lane.b32.xlu1 %v932_v2, %s793_s9  ;;  %p728_p4 = pnand %p727_p2, %p721_p13 }
  0x53   : > { %244 = vrot.lane.b32.xlu0 %v932_v2, %s795_s10 }
  0x54   : > { %268 = vrot.lane.b32.xlu1 %v930_v1, %s798_s11 }
  0x57   : > { %266 = vrot.lane.b32.xlu0 %v934_v3, %s798_s11 }
  0x58   : > { %278 = vperm.xlu1 %686, %v275_v8  }
  0x5b   : > { %264 = vrot.lane.b32.xlu0 %v932_v2, %s798_s11 }
  0xaa   : > { %v197_v10 = vpop.permute.xlu1 %196 }
  0xad   : > { %v653_v12 = vpop.permute.xlu0 %652 }
  0xae   : > { %v655_v13 = vunpack.i.h.bf16 %v653_v12  ;;  %v654_v14 = vunpack.i.l.bf16 %v653_v12  ;;  %v209_v15 = vpop.permute.xlu1 %208 }
  0xb0   : > { %v202_v20 = vsel %vm200_vm1, %v654_v14, %v655_v13  ;;  %v201_v21 = vsel %vm200_vm1, %v655_v13, %v197_v10  ;;  %v203_v29 = vsel %vm200_vm1, %v197_v10, %v654_v14  ;;  %v274_v14 = vld [vmem:[%s1062_s1] sm:$0xff] }
  0xb1   : > { %v658_v16 = vpop.permute.xlu0 %657 }
  0xb2   : > { %v660_v17 = vunpack.i.h.bf16 %v658_v16  ;;  %v659_v18 = vunpack.i.l.bf16 %v658_v16  ;;  %v668_v19 = vpop.permute.xlu1 %667 }
  0xb3   : > { %v670_v22 = vunpack.i.h.bf16 %v668_v19  ;;  %v669_v23 = vunpack.i.l.bf16 %v668_v19 }
  0xb4   : > { %v212_v24 = vsel %vm210_vm2, %v659_v18, %v660_v17  ;;  %v211_v25 = vsel %vm210_vm2, %v660_v17, %v209_v15  ;;  %v213_v30 = vsel %vm210_vm2, %v209_v15, %v659_v18 }
  0xb5   : > { %v663_v26 = vpop.permute.xlu0 %662  ;;  %v563_v27 = vpack.c.bf16 %v212_v24, %v202_v20  ;;  %v580_v28 = vpack.c.bf16 %v211_v25, %v201_v21  ;;  %v565_v33 = vpack.c.bf16 %v213_v30, %v203_v29  ;;  %v232_v34 = vsel %vm230_vm3, %v669_v23, %v670_v22 }
  0xb6   : > { %v665_v31 = vunpack.i.h.bf16 %v663_v26  ;;  %v664_v32 = vunpack.i.l.bf16 %v663_v26  ;;  %v229_v35 = vpop.permute.xlu1 %228 }
  0xb7   : > { %564 = vmatprep.subr.bf16.mxu0 %v563_v27  ;;  %581 = vmatpush3.bf16.msra.mxu1 %v580_v28  ;;  %v231_v36 = vsel %vm230_vm3, %v670_v22, %v229_v35  ;;  %v233_v37 = vsel %vm230_vm3, %v229_v35, %v669_v23 }
  0xb8   : > { %566 = vmatpush1.bf16.msra.mxu0 %v565_v33  ;;  %v222_v38 = vsel %vm220_vm4, %v664_v32, %v665_v31  ;;  %582 = vmatprep.subr.bf16.mxu1 %v787_v0 }
  0xb9   : > { %v219_v39 = vpop.permute.xlu0 %218  ;;  %v567_v40 = vpack.c.bf16 %v232_v34, %v222_v38 }
  0xba   : > { %v221_v41 = vsel %vm220_vm4, %v665_v31, %v219_v39  ;;  %v223_v42 = vsel %vm220_vm4, %v219_v39, %v664_v32  ;;  %v235_v45 = vpop.permute.xlu1 %234 }
  0xbb   : > { %v569_v43 = vpack.c.bf16 %v233_v37, %v223_v42  ;;  %v583_v44 = vpack.c.bf16 %v231_v36, %v221_v41  ;;  %568 = vmatprep.subr.bf16.mxu0 %v567_v40 }
  0xbd   : > { %v673_v46 = vpop.permute.xlu0 %672  ;;  %570 = vmatpush1.bf16.msra.mxu0 %v569_v43  ;;  %584 = vmatpush3.bf16.msra.mxu1 %v583_v44 }
  0xbe   : > { %v675_v47 = vunpack.i.h.bf16 %v673_v46  ;;  %v674_v48 = vunpack.i.l.bf16 %v673_v46  ;;  %585 = vmatprep.subr.bf16.mxu1 %v787_v0  ;;  %v683_v49 = vpop.permute.xlu1 %682 }
  0xbf   : > { %v685_v50 = vunpack.i.h.bf16 %v683_v49  ;;  %v684_v51 = vunpack.i.l.bf16 %v683_v49 }
  0xc0   : > { %v241_v52 = vsel %vm240_vm5, %v674_v48, %v675_v47  ;;  %v243_v53 = vsel %vm240_vm5, %v675_v47, %v235_v45  ;;  %v242_v57 = vsel %vm240_vm5, %v235_v45, %v674_v48 }
  0xc1   : > { %v678_v54 = vpop.permute.xlu0 %677  ;;  %v571_v55 = vpack.c.bf16 %v241_v52, %v934_v3  ;;  %v586_v56 = vpack.c.bf16 %v243_v53, %v930_v1  ;;  %v573_v60 = vpack.c.bf16 %v242_v57, %v932_v2  ;;  %v261_v61 = vsel %vm260_vm6, %v684_v51, %v685_v50 }
  0xc2   : > { %v680_v58 = vunpack.i.h.bf16 %v678_v54  ;;  %v679_v59 = vunpack.i.l.bf16 %v678_v54  ;;  %v255_v62 = vpop.permute.xlu1 %254 }
  0xc3   : > { %572 = vmatprep.subr.bf16.mxu0 %v571_v55  ;;  %587 = vmatpush3.bf16.msra.mxu1 %v586_v56  ;;  %v262_v63 = vsel %vm260_vm6, %v255_v62, %v684_v51  ;;  %v263_v1 = vsel %vm260_vm6, %v685_v50, %v255_v62 }
  0xc4   : > { %574 = vmatpush1.bf16.msra.mxu0 %v573_v60  ;;  %v251_v3 = vsel %vm250_vm7, %v679_v59, %v680_v58  ;;  %588 = vmatprep.subr.bf16.mxu1 %v787_v0 }
  0xc5   : > { %v245_v4 = vpop.permute.xlu0 %244  ;;  %v575_v2 = vpack.c.bf16 %v261_v61, %v251_v3 }
  0xc6   : > { %v252_v5 = vsel %vm250_vm7, %v245_v4, %v679_v59  ;;  %v253_v7 = vsel %vm250_vm7, %v680_v58, %v245_v4  ;;  %v269_v10 = vpop.permute.xlu1 %268 }
  0xc7   : > { %v577_v8 = vpack.c.bf16 %v262_v63, %v252_v5  ;;  %v589_v9 = vpack.c.bf16 %v263_v1, %v253_v7  ;;  %576 = vmatprep.subr.bf16.mxu0 %v575_v2 }
  0xc9   : > { %v267_v12 = vpop.permute.xlu0 %266  ;;  %578 = vmatpush1.bf16.msra.mxu0 %v577_v8  ;;  %590 = vmatpush3.bf16.msra.mxu1 %v589_v9 }
  0xca   : > { %v271_v13 = vsel %vm270_vm8, %v267_v12, %v269_v10  ;;  %558 = vmatprep.subr.mxu1 %v794_v6 }
  0xcb   : > { %301 = vmatprep.subr.mxu0 %v271_v13 }
  0xcd   : > { %v265_v0 = vpop.permute.xlu0 %264 }
  0xce   : > { %v272_v15 = vsel %vm270_vm8, %v265_v0, %v267_v12  ;;  %v273_v16 = vsel %vm270_vm8, %v269_v10, %v265_v0 }
  0xcf   : > { %302 = vmatpush1.msra.mxu0 %v272_v15  ;;  %559 = vmatpush3.msra.mxu1 %v273_v16 }
  0xd0   : > { %525 = vmatmul.mubr.msk.f32.vlgmr.msra.gmra.mrb[0].mxu0 %vm281_vm9, %v274_v14  ;;  %561 = vmatmul.mubr.msk.f32.vlgmr.msra.gmra.mrb[0].mxu1 %vm281_vm9, %v274_v14 }
  0xd7   : > { %v279_v11 = vpop.permute.xlu1 %278 }
 0x1a3   : > { %v351_v17 = vpop.f32.mrb[0].mxu0  ;;  %v422_v18 = vpop.f32.mrb[0].mxu1 }
 0x1a4   : > { %v352_v19 = vadd.f32 %v351_v17, %v279_v11  ;;  %v423_v6 = vadd.f32 %v422_v18, %v279_v11  ;;  %v353_v20 = vpop.f32.mrb[1].mxu0  ;;  %v562_v21 = vpop.f32.mrb[1].mxu1 }
 0x1a5   : > { %v354_v22 = vadd.f32 %v353_v20, %v279_v11 }
 0x1a6   : > { %v426_v23 = vmul.f32 0.01, %v352_v19  ;;  %v428_v24 = vmul.f32 0.01, %v423_v6 }
 0x1a7   : > { %v427_v25 = vmul.f32 0.01, %v354_v22 }
 0x1a8   : > { %v429_v26 = vmax.f32 %v352_v19, %v426_v23  ;;  %v431_v27 = vmax.f32 %v423_v6, %v428_v24 }
 0x1a9   : > { %v430_v28 = vmax.f32 %v354_v22, %v427_v25 }
 0x1aa   : > { %432 = vst [vmem:[%s186_s27] sm:$0xff] %v429_v26  ;;  %434 = vst [vmem:[%s186_s27 + $0x10] sm:$0xff] %v431_v27 }
 0x1ab   : > { %433 = vst [vmem:[%s186_s27 + $0x8] sm:$0xff] %v430_v28 }
 0x1ac   : > { %731 = shalt.err (!%p728_p4)
}
 0x1ad   : > { %s732_s28 = scalar_lea.hbm %s1017_s6, 384  ;;  %s736_s11 = scalar_lea.hbm %s1064_s3, 768 }
 0x1ae   : > { %p733_p7 = scmp.ne.s32.totalorder %s1017_s6, %s732_s28  ;;  %p737_p0 = scmp.lt.u32.totalorder %s1017_s6, %s1064_s3 }
 0x1af   : > { %p738_p1 = scmp.lt.u32.totalorder %s736_s11, %s732_s28  ;;  %p740_p6 = scmp.lt.u32.totalorder %s732_s28, %s1017_s6 }
 0x1b0   : > { %p734_p8 = pnand %p733_p7, %p1072_p11 }
 0x1b1   : > { %p739_p3 = por %p738_p1, %p737_p0 }
 0x1b2   : > { %p735_p9 = pneg %p734_p8 }
 0x1b3   : > { %p741_p12 = por %p740_p6, %p739_p3 }
 0x1b5   : > { %p742_p13 = pnand %p741_p12, %p735_p9 }
 0x1b7   : > { %745 = shalt.err (!%p742_p13)
}
 0x1b8   : > { %595 = dma.vmem_to_hbm [thread:$0]  (%p1072_p11), %s1019_s5, 384, %s1017_s6, %s436_s16  }
 0x1b9 PF: > { %s462_s20 = sand.u32 1, %s772_s12   ;;  %p1073_p5 = scmp.ne.s32.totalorder %s1068_s24, 0 }
 0x1ba   : > { %p1074_p10 = scmp.ge.s32.totalorder %s784_s15, 2  ;;  %s463_s25 = scalar_lea.sflag [#allocation4], %s462_s20 }
 0x1bc   : > { %p602_p2 = pnand %p1074_p10, %p1073_p5 }
 0x1be   : > { %767 = dma.done.wait (!%p602_p2), %s463_s25, 384  }
 0x1bf   : > { %769 = vsyncadd (!%p602_p2), %s463_s25, 4294966912  ;;  %p16_p4 = scmp.ge.s32.totalorder %s845_s18, 4   ;;  %s1075_s12 = smov %s776_s13 }
 0x1c0   : > { %s1076_s13 = smov %s780_s14  ;;  %s1077_s14 = smov %s857_s21 }
 0x1c1   : > { %s1078_s15 = smov %s845_s18  ;;  %18 = sbr.rel (!%p16_p4) target bundleno = 5 (0x5), region = 77 }
 0x1c8   :  { %468 = vsyncpa [#allocation3], 1 }
 0x1c9   :  { %470 = vsyncpa [#allocation3 + $0x1], 1 }
 0x1ca   :  { %471 = vsyncpa [#allocation4], 1 }
 0x1cb   :  { %473 = vsyncpa [#allocation4 + $0x1], 1 }

</bundles_post_ra>
